<compile_context>
chip_gen: v7x
topology: tpu7x:2x2x1
jax: 0.10.0
libtpu: 0.0.40
codegen_flags: <defaults>
</compile_context>

<pallas_src>
import math
from functools import partial

import jax
import jax.numpy as jnp
from jax.experimental import pallas as pl
from jax.experimental.pallas import tpu as pltpu


# ----------------------------------------------------------------------------
# Pallas kernel (one grid step = one weight sample):
#   batched input projection (bias folded in) + LSTM recurrence (gate order
#   i, f, g, o as in blitz BayesianLSTM) + Linear(H, 1) head on the last hidden
#   state (VPU multiply + lane reduce; bias added in the wrapper).
# The g-gate columns of W_ih/W_hh/bias arrive pre-scaled by 2 so a single
# sigmoid over the full gates vreg also yields tanh(g) = 2*sigmoid(2g) - 1.
# ----------------------------------------------------------------------------
def _bbb_lstm_kernel(x2d_ref, wih_ref, whh_ref, bias_ref, wlin_ref, out_ref,
                     *scratch, T, Bp, H, unroll):
    # One MXU pass projecting every time step at once (bf16 operands, f32 acc),
    # gate bias folded in:  x2d: (T*Bp, F)  W_ih: (F, 4H)  ->  (T*Bp, 4H)
    x_proj = (jnp.dot(x2d_ref[...].astype(jnp.bfloat16),
                      wih_ref[...].astype(jnp.bfloat16),
                      preferred_element_type=jnp.float32)
              + bias_ref[...])

    w_hh_bf = whh_ref[...].astype(jnp.bfloat16)        # (H, 4H), cast once
    h = jnp.zeros((Bp, H), jnp.float32)
    c = jnp.zeros((Bp, H), jnp.float32)

    def step(xp_t, h, c):
        gates = xp_t + jnp.dot(h.astype(jnp.bfloat16), w_hh_bf,
                               preferred_element_type=jnp.float32)   # (Bp, 4H)
        sig = jax.nn.sigmoid(gates)            # single EUP pass for all 4 gates
        i_g = sig[:, 0 * H:1 * H]
        f_g = sig[:, 1 * H:2 * H]
        g_g = 2.0 * sig[:, 2 * H:3 * H] - 1.0  # tanh(g); g columns pre-scaled by 2
        o_g = sig[:, 3 * H:4 * H]
        c = f_g * c + i_g * g_g
        h = o_g * jnp.tanh(c)
        return h, c

    if unroll:
        # Short static sequence: fully unrolled, x_proj kept as a value (T vregs live).
        for t in range(T):
            h, c = step(x_proj[t * Bp:(t + 1) * Bp, :], h, c)
    else:
        # Long sequence: constant vreg pressure via VMEM scratch + fori_loop.
        xproj_ref = scratch[0]
        xproj_ref[...] = x_proj

        def body(t, carry):
            h, c = carry
            off = pl.multiple_of(t * Bp, Bp)
            return step(xproj_ref[pl.ds(off, Bp), :], h, c)

        h, c = jax.lax.fori_loop(0, T, body, (h, c))

    # many-to-one head: Linear(H, 1) as VPU multiply + lane reduce (no MXU N=1 pass).
    # Output last dim is 1 (masked store) — negligible at this size.
    out_ref[...] = jnp.sum(h * wlin_ref[...], axis=-1, keepdims=True)


def bbb_model_forward_mc(x, w_ih_s, w_hh_s, bias_s, w_lin_s, b_lin_s):
    """Monte-Carlo forward over S independent weight samples.

    x:       (B, T, F) float32
    w_ih_s:  (S, F, 4H)   w_hh_s: (S, H, 4H)   bias_s: (S, 1, 4H)
    w_lin_s: (S, H, 1)    b_lin_s: (S, 1, 1)
    Returns (S, B, 1) float32.
    """
    B, T, F = x.shape
    S, H, _ = w_hh_s.shape
    assert w_ih_s.shape == (S, F, 4 * H)
    assert bias_s.shape == (S, 1, 4 * H)
    assert w_lin_s.shape == (S, H, 1)

    # Pad batch to a multiple of 8 sublanes; padded (zero) rows are independent of
    # the real rows and are sliced off at the end.
    Bp = max(8, pl.cdiv(B, 8) * 8)

    # (B, T, F) -> (T, B, F) -> pad batch -> (T*Bp, F): one lane-dense slab whose
    # rows for step t are x2d[t*Bp:(t+1)*Bp].
    x_tbf = jnp.transpose(x, (1, 0, 2))
    x_tbf = jnp.pad(x_tbf, ((0, 0), (0, Bp - B), (0, 0)))
    x2d = jnp.reshape(x_tbf, (T * Bp, F)).astype(jnp.float32)

    # Merged sigmoid/tanh trick: scale the g-gate quarter of the columns by 2
    # (exact power-of-two scaling; gate order is i, f, g, o).
    gate_scale = jnp.concatenate([
        jnp.ones((2 * H,), jnp.float32),
        jnp.full((H,), 2.0, jnp.float32),
        jnp.ones((H,), jnp.float32),
    ])
    w_ih_s = (w_ih_s * gate_scale).astype(jnp.float32)
    w_hh_s = (w_hh_s * gate_scale).astype(jnp.float32)
    bias_s = (bias_s * gate_scale).astype(jnp.float32)

    w_lin_rows = jnp.transpose(w_lin_s, (0, 2, 1)).astype(jnp.float32)  # (S, 1, H)

    unroll = T <= 16
    scratch_shapes = [] if unroll else [pltpu.VMEM((T * Bp, 4 * H), jnp.float32)]

    kernel = partial(_bbb_lstm_kernel, T=T, Bp=Bp, H=H, unroll=unroll)

    out = pl.pallas_call(
        kernel,
        out_shape=jax.ShapeDtypeStruct((S, Bp, 1), jnp.float32),
        grid=(S,),
        in_specs=[
            pl.BlockSpec((T * Bp, F), lambda s: (0, 0)),        # x2d (shared)
            pl.BlockSpec((None, F, 4 * H), lambda s: (s, 0, 0)),  # W_ih  per sample
            pl.BlockSpec((None, H, 4 * H), lambda s: (s, 0, 0)),  # W_hh  per sample
            pl.BlockSpec((None, 1, 4 * H), lambda s: (s, 0, 0)),  # bias  per sample
            pl.BlockSpec((None, 1, H), lambda s: (s, 0, 0)),      # W_lin row per sample
        ],
        out_specs=pl.BlockSpec((None, Bp, 1), lambda s: (s, 0, 0)),
        scratch_shapes=scratch_shapes,
        compiler_params=pltpu.CompilerParams(
            dimension_semantics=("parallel",)),
    )(x2d, w_ih_s, w_hh_s, bias_s, w_lin_rows)

    # Linear bias folded in the wrapper (removes the padded SMEM operand).
    return out[:, :B, :] + b_lin_s.reshape(S, 1, 1)


def bbb_model_forward(x, w_ih, w_hh, bias, w_lin, b_lin):
    """Module-faithful single-sample forward. x: (B, T, F) -> (B, 1)."""
    out = bbb_model_forward_mc(x, w_ih[None], w_hh[None], bias[None],
                               w_lin[None], b_lin[None])
    return out[0]

# TODO(synk): num_layers=2 / many-to-many / discharge_as_input branches of the module are
# not implemented (default config is many-to-one, single layer).


# ----------------------------------------------------------------------------
# Deterministic "Bayes by Backprop" weight sampling (glue, plain JAX):
#   w = mu + log1p(exp(rho)) * eps,  mu ~ N(0, 0.1), rho = posterior_rho_init
# ----------------------------------------------------------------------------
def sample_bayesian_weight(key, shape, posterior_rho_init=-6.0):
    k_mu, k_eps = jax.random.split(key)
    mu = 0.1 * jax.random.normal(k_mu, shape, dtype=jnp.float32)
    sigma = jnp.log1p(jnp.exp(jnp.float32(posterior_rho_init)))
    eps = jax.random.normal(k_eps, shape, dtype=jnp.float32)
    return mu + sigma * eps


def make_params(key, input_size, hidden_size):
    k1, k2, k3, k4, k5 = jax.random.split(key, 5)
    w_ih = sample_bayesian_weight(k1, (input_size, 4 * hidden_size))
    w_hh = sample_bayesian_weight(k2, (hidden_size, 4 * hidden_size))
    bias = sample_bayesian_weight(k3, (1, 4 * hidden_size))
    # nn.Linear(hidden, 1): deterministic uniform init
    bound = 1.0 / math.sqrt(hidden_size)
    w_lin = jax.random.uniform(k4, (hidden_size, 1), jnp.float32, -bound, bound)
    b_lin = jax.random.uniform(k5, (1, 1), jnp.float32, -bound, bound)
    return w_ih, w_hh, bias, w_lin, b_lin


# ----------------------------------------------------------------------------
# Pure-JAX reference (f32 everywhere) for correctness check.
# ----------------------------------------------------------------------------
def ref_forward(x, w_ih, w_hh, bias, w_lin, b_lin):
    B, T, F = x.shape
    H = w_hh.shape[0]
    h = jnp.zeros((B, H), jnp.float32)
    c = jnp.zeros((B, H), jnp.float32)

    def step(carry, x_t):
        h, c = carry
        gates = x_t @ w_ih + h @ w_hh + bias
        i_g = jax.nn.sigmoid(gates[:, 0 * H:1 * H])
        f_g = jax.nn.sigmoid(gates[:, 1 * H:2 * H])
        g_g = jnp.tanh(gates[:, 2 * H:3 * H])
        o_g = jax.nn.sigmoid(gates[:, 3 * H:4 * H])
        c = f_g * c + i_g * g_g
        h = o_g * jnp.tanh(c)
        return (h, c), None

    (h, c), _ = jax.lax.scan(step, (h, c), jnp.transpose(x, (1, 0, 2)))
    return h @ w_lin + b_lin


if __name__ == "__main__":
    # Small shapes consistent with the module: input_size=5 (defaults), seq=8,
    # batch=2, hidden=32.
    B, T, F, H = 2, 8, 5, 32
    # bf16 MXU operands with f32 accumulation -> loosened tolerance vs f32 reference.
    ATOL = RTOL = 2e-2

    key = jax.random.PRNGKey(0)
    k_x, k_p = jax.random.split(key)
    x = jax.random.normal(k_x, (B, T, F), dtype=jnp.float32)
    w_ih, w_hh, bias, w_lin, b_lin = make_params(k_p, F, H)

    # Module-faithful single-sample forward.
    out = bbb_model_forward(x, w_ih, w_hh, bias, w_lin, b_lin)
    out = jax.block_until_ready(out)
    ref = ref_forward(x, w_ih, w_hh, bias, w_lin, b_lin)
    assert out.shape == (B, 1)
    assert jnp.allclose(out, ref, atol=ATOL, rtol=RTOL), (out, ref)

    # Monte-Carlo path: S independent weight samples gridded over a parallel axis.
    S = 4
    keys = jax.random.split(jax.random.PRNGKey(1), S)
    params_s = [make_params(k, F, H) for k in keys]
    w_ih_s = jnp.stack([p[0] for p in params_s])
    w_hh_s = jnp.stack([p[1] for p in params_s])
    bias_s = jnp.stack([p[2] for p in params_s])
    w_lin_s = jnp.stack([p[3] for p in params_s])
    b_lin_s = jnp.stack([p[4] for p in params_s])

    out_mc = bbb_model_forward_mc(x, w_ih_s, w_hh_s, bias_s, w_lin_s, b_lin_s)
    out_mc = jax.block_until_ready(out_mc)
    assert out_mc.shape == (S, B, 1)
    for s in range(S):
        ref_s = ref_forward(x, *params_s[s])
        assert jnp.allclose(out_mc[s], ref_s, atol=ATOL, rtol=RTOL), (s, out_mc[s], ref_s)

    print("KERNEL_OK")
</pallas_src>

<mosaic_0001>
module attributes {stable_mosaic.version = 11 : i64} {
  func.func @_bbb_lstm_kernel(%arg0: i32, %arg1: memref<64x5xf32, #tpu.memory_space<vmem>>, %arg2: memref<1x5x128xf32, #tpu.memory_space<vmem>>, %arg3: memref<1x32x128xf32, #tpu.memory_space<vmem>>, %arg4: memref<1x1x128xf32, #tpu.memory_space<vmem>>, %arg5: memref<1x1x32xf32, #tpu.memory_space<vmem>>, %arg6: memref<1x8x1xf32, #tpu.memory_space<vmem>>) attributes {dimension_semantics = [#tpu.dimension_semantics<parallel>], iteration_bounds = array<i64: 1>, scalar_prefetch = 0 : i64, scratch_operands = 0 : i64, tpu.core_type = #tpu.core_type<tc>, window_params = [{pipeline_mode = #tpu.pipeline_mode<synchronous>, transform_indices = @transform_0, window_bounds = array<i64: 64, 5>}, {transform_indices = @transform_1, window_bounds = array<i64: 1, 5, 128>}, {transform_indices = @transform_2, window_bounds = array<i64: 1, 32, 128>}, {transform_indices = @transform_3, window_bounds = array<i64: 1, 1, 128>}, {transform_indices = @transform_4, window_bounds = array<i64: 1, 1, 32>}, {transform_indices = @transform_5, window_bounds = array<i64: 1, 8, 1>}]} {
    %c0 = arith.constant 0 : index
    %c0_0 = arith.constant 0 : index
    %0 = vector.load %arg1[%c0, %c0_0] : memref<64x5xf32, #tpu.memory_space<vmem>>, vector<64x5xf32>
    %1 = arith.truncf %0 : vector<64x5xf32> to vector<64x5xbf16>
    %c0_1 = arith.constant 0 : index
    %c0_2 = arith.constant 0 : index
    %c0_3 = arith.constant 0 : index
    %2 = vector.load %arg2[%c0_1, %c0_2, %c0_3] : memref<1x5x128xf32, #tpu.memory_space<vmem>>, vector<1x5x128xf32>
    %3 = vector.shape_cast %2 : vector<1x5x128xf32> to vector<5x128xf32>
    %4 = arith.truncf %3 : vector<5x128xf32> to vector<5x128xbf16>
    %cst = arith.constant dense<0.000000e+00> : vector<64x128xf32>
    %5 = tpu.matmul %1, %4, %cst {dimension_numbers = #tpu.dot_dimension_numbers<[1], [0], [0], [1], [0, 0, 1, 1], [], []>} : vector<64x5xbf16>, vector<5x128xbf16>, vector<64x128xf32> -> vector<64x128xf32>
    %c0_4 = arith.constant 0 : index
    %c0_5 = arith.constant 0 : index
    %c0_6 = arith.constant 0 : index
    %6 = vector.load %arg4[%c0_4, %c0_5, %c0_6] : memref<1x1x128xf32, #tpu.memory_space<vmem>>, vector<1x1x128xf32>
    %7 = vector.shape_cast %6 : vector<1x1x128xf32> to vector<1x128xf32>
    %8 = vector.broadcast %7 : vector<1x128xf32> to vector<64x128xf32>
    %9 = arith.addf %5, %8 : vector<64x128xf32>
    %c0_7 = arith.constant 0 : index
    %c0_8 = arith.constant 0 : index
    %c0_9 = arith.constant 0 : index
    %10 = vector.load %arg3[%c0_7, %c0_8, %c0_9] : memref<1x32x128xf32, #tpu.memory_space<vmem>>, vector<1x32x128xf32>
    %11 = vector.shape_cast %10 : vector<1x32x128xf32> to vector<32x128xf32>
    %12 = arith.truncf %11 : vector<32x128xf32> to vector<32x128xbf16>
    %cst_10 = arith.constant 0.000000e+00 : f32
    %13 = vector.broadcast %cst_10 : f32 to vector<8x32xf32>
    %cst_11 = arith.constant 0.000000e+00 : f32
    %14 = vector.broadcast %cst_11 : f32 to vector<8x32xf32>
    %15 = vector.extract_strided_slice %9 {offsets = [0, 0], sizes = [8, 128], strides = [1, 1]} : vector<64x128xf32> to vector<8x128xf32>
    %16 = arith.truncf %13 : vector<8x32xf32> to vector<8x32xbf16>
    %cst_12 = arith.constant dense<0.000000e+00> : vector<8x128xf32>
    %17 = tpu.matmul %16, %12, %cst_12 {dimension_numbers = #tpu.dot_dimension_numbers<[1], [0], [0], [1], [0, 0, 1, 1], [], []>} : vector<8x32xbf16>, vector<32x128xbf16>, vector<8x128xf32> -> vector<8x128xf32>
    %18 = arith.addf %15, %17 : vector<8x128xf32>
    %19 = arith.negf %18 : vector<8x128xf32>
    %20 = math.exp %19 : vector<8x128xf32>
    %cst_13 = arith.constant 1.000000e+00 : f32
    %21 = vector.broadcast %cst_13 : f32 to vector<8x128xf32>
    %22 = arith.addf %21, %20 : vector<8x128xf32>
    %23 = arith.divf %21, %22 : vector<8x128xf32>
    %24 = vector.extract_strided_slice %23 {offsets = [0, 0], sizes = [8, 32], strides = [1, 1]} : vector<8x128xf32> to vector<8x32xf32>
    %25 = vector.extract_strided_slice %23 {offsets = [0, 32], sizes = [8, 32], strides = [1, 1]} : vector<8x128xf32> to vector<8x32xf32>
    %26 = vector.extract_strided_slice %23 {offsets = [0, 64], sizes = [8, 32], strides = [1, 1]} : vector<8x128xf32> to vector<8x32xf32>
    %cst_14 = arith.constant 2.000000e+00 : f32
    %27 = vector.broadcast %cst_14 : f32 to vector<8x32xf32>
    %28 = arith.mulf %27, %26 : vector<8x32xf32>
    %cst_15 = arith.constant 1.000000e+00 : f32
    %29 = vector.broadcast %cst_15 : f32 to vector<8x32xf32>
    %30 = arith.subf %28, %29 : vector<8x32xf32>
    %31 = vector.extract_strided_slice %23 {offsets = [0, 96], sizes = [8, 32], strides = [1, 1]} : vector<8x128xf32> to vector<8x32xf32>
    %32 = arith.mulf %25, %14 : vector<8x32xf32>
    %33 = arith.mulf %24, %30 : vector<8x32xf32>
    %34 = arith.addf %32, %33 : vector<8x32xf32>
    %35 = math.tanh %34 : vector<8x32xf32>
    %36 = arith.mulf %31, %35 : vector<8x32xf32>
    %37 = vector.extract_strided_slice %9 {offsets = [8, 0], sizes = [8, 128], strides = [1, 1]} : vector<64x128xf32> to vector<8x128xf32>
    %38 = arith.truncf %36 : vector<8x32xf32> to vector<8x32xbf16>
    %cst_16 = arith.constant dense<0.000000e+00> : vector<8x128xf32>
    %39 = tpu.matmul %38, %12, %cst_16 {dimension_numbers = #tpu.dot_dimension_numbers<[1], [0], [0], [1], [0, 0, 1, 1], [], []>} : vector<8x32xbf16>, vector<32x128xbf16>, vector<8x128xf32> -> vector<8x128xf32>
    %40 = arith.addf %37, %39 : vector<8x128xf32>
    %41 = arith.negf %40 : vector<8x128xf32>
    %42 = math.exp %41 : vector<8x128xf32>
    %cst_17 = arith.constant 1.000000e+00 : f32
    %43 = vector.broadcast %cst_17 : f32 to vector<8x128xf32>
    %44 = arith.addf %43, %42 : vector<8x128xf32>
    %45 = arith.divf %43, %44 : vector<8x128xf32>
    %46 = vector.extract_strided_slice %45 {offsets = [0, 0], sizes = [8, 32], strides = [1, 1]} : vector<8x128xf32> to vector<8x32xf32>
    %47 = vector.extract_strided_slice %45 {offsets = [0, 32], sizes = [8, 32], strides = [1, 1]} : vector<8x128xf32> to vector<8x32xf32>
    %48 = vector.extract_strided_slice %45 {offsets = [0, 64], sizes = [8, 32], strides = [1, 1]} : vector<8x128xf32> to vector<8x32xf32>
    %cst_18 = arith.constant 2.000000e+00 : f32
    %49 = vector.broadcast %cst_18 : f32 to vector<8x32xf32>
    %50 = arith.mulf %49, %48 : vector<8x32xf32>
    %cst_19 = arith.constant 1.000000e+00 : f32
    %51 = vector.broadcast %cst_19 : f32 to vector<8x32xf32>
    %52 = arith.subf %50, %51 : vector<8x32xf32>
    %53 = vector.extract_strided_slice %45 {offsets = [0, 96], sizes = [8, 32], strides = [1, 1]} : vector<8x128xf32> to vector<8x32xf32>
    %54 = arith.mulf %47, %34 : vector<8x32xf32>
    %55 = arith.mulf %46, %52 : vector<8x32xf32>
    %56 = arith.addf %54, %55 : vector<8x32xf32>
    %57 = math.tanh %56 : vector<8x32xf32>
    %58 = arith.mulf %53, %57 : vector<8x32xf32>
    %59 = vector.extract_strided_slice %9 {offsets = [16, 0], sizes = [8, 128], strides = [1, 1]} : vector<64x128xf32> to vector<8x128xf32>
    %60 = arith.truncf %58 : vector<8x32xf32> to vector<8x32xbf16>
    %cst_20 = arith.constant dense<0.000000e+00> : vector<8x128xf32>
    %61 = tpu.matmul %60, %12, %cst_20 {dimension_numbers = #tpu.dot_dimension_numbers<[1], [0], [0], [1], [0, 0, 1, 1], [], []>} : vector<8x32xbf16>, vector<32x128xbf16>, vector<8x128xf32> -> vector<8x128xf32>
    %62 = arith.addf %59, %61 : vector<8x128xf32>
    %63 = arith.negf %62 : vector<8x128xf32>
    %64 = math.exp %63 : vector<8x128xf32>
    %cst_21 = arith.constant 1.000000e+00 : f32
    %65 = vector.broadcast %cst_21 : f32 to vector<8x128xf32>
    %66 = arith.addf %65, %64 : vector<8x128xf32>
    %67 = arith.divf %65, %66 : vector<8x128xf32>
    %68 = vector.extract_strided_slice %67 {offsets = [0, 0], sizes = [8, 32], strides = [1, 1]} : vector<8x128xf32> to vector<8x32xf32>
    %69 = vector.extract_strided_slice %67 {offsets = [0, 32], sizes = [8, 32], strides = [1, 1]} : vector<8x128xf32> to vector<8x32xf32>
    %70 = vector.extract_strided_slice %67 {offsets = [0, 64], sizes = [8, 32], strides = [1, 1]} : vector<8x128xf32> to vector<8x32xf32>
    %cst_22 = arith.constant 2.000000e+00 : f32
    %71 = vector.broadcast %cst_22 : f32 to vector<8x32xf32>
    %72 = arith.mulf %71, %70 : vector<8x32xf32>
    %cst_23 = arith.constant 1.000000e+00 : f32
    %73 = vector.broadcast %cst_23 : f32 to vector<8x32xf32>
    %74 = arith.subf %72, %73 : vector<8x32xf32>
    %75 = vector.extract_strided_slice %67 {offsets = [0, 96], sizes = [8, 32], strides = [1, 1]} : vector<8x128xf32> to vector<8x32xf32>
    %76 = arith.mulf %69, %56 : vector<8x32xf32>
    %77 = arith.mulf %68, %74 : vector<8x32xf32>
    %78 = arith.addf %76, %77 : vector<8x32xf32>
    %79 = math.tanh %78 : vector<8x32xf32>
    %80 = arith.mulf %75, %79 : vector<8x32xf32>
    %81 = vector.extract_strided_slice %9 {offsets = [24, 0], sizes = [8, 128], strides = [1, 1]} : vector<64x128xf32> to vector<8x128xf32>
    %82 = arith.truncf %80 : vector<8x32xf32> to vector<8x32xbf16>
    %cst_24 = arith.constant dense<0.000000e+00> : vector<8x128xf32>
    %83 = tpu.matmul %82, %12, %cst_24 {dimension_numbers = #tpu.dot_dimension_numbers<[1], [0], [0], [1], [0, 0, 1, 1], [], []>} : vector<8x32xbf16>, vector<32x128xbf16>, vector<8x128xf32> -> vector<8x128xf32>
    %84 = arith.addf %81, %83 : vector<8x128xf32>
    %85 = arith.negf %84 : vector<8x128xf32>
    %86 = math.exp %85 : vector<8x128xf32>
    %cst_25 = arith.constant 1.000000e+00 : f32
    %87 = vector.broadcast %cst_25 : f32 to vector<8x128xf32>
    %88 = arith.addf %87, %86 : vector<8x128xf32>
    %89 = arith.divf %87, %88 : vector<8x128xf32>
    %90 = vector.extract_strided_slice %89 {offsets = [0, 0], sizes = [8, 32], strides = [1, 1]} : vector<8x128xf32> to vector<8x32xf32>
    %91 = vector.extract_strided_slice %89 {offsets = [0, 32], sizes = [8, 32], strides = [1, 1]} : vector<8x128xf32> to vector<8x32xf32>
    %92 = vector.extract_strided_slice %89 {offsets = [0, 64], sizes = [8, 32], strides = [1, 1]} : vector<8x128xf32> to vector<8x32xf32>
    %cst_26 = arith.constant 2.000000e+00 : f32
    %93 = vector.broadcast %cst_26 : f32 to vector<8x32xf32>
    %94 = arith.mulf %93, %92 : vector<8x32xf32>
    %cst_27 = arith.constant 1.000000e+00 : f32
    %95 = vector.broadcast %cst_27 : f32 to vector<8x32xf32>
    %96 = arith.subf %94, %95 : vector<8x32xf32>
    %97 = vector.extract_strided_slice %89 {offsets = [0, 96], sizes = [8, 32], strides = [1, 1]} : vector<8x128xf32> to vector<8x32xf32>
    %98 = arith.mulf %91, %78 : vector<8x32xf32>
    %99 = arith.mulf %90, %96 : vector<8x32xf32>
    %100 = arith.addf %98, %99 : vector<8x32xf32>
    %101 = math.tanh %100 : vector<8x32xf32>
    %102 = arith.mulf %97, %101 : vector<8x32xf32>
    %103 = vector.extract_strided_slice %9 {offsets = [32, 0], sizes = [8, 128], strides = [1, 1]} : vector<64x128xf32> to vector<8x128xf32>
    %104 = arith.truncf %102 : vector<8x32xf32> to vector<8x32xbf16>
    %cst_28 = arith.constant dense<0.000000e+00> : vector<8x128xf32>
    %105 = tpu.matmul %104, %12, %cst_28 {dimension_numbers = #tpu.dot_dimension_numbers<[1], [0], [0], [1], [0, 0, 1, 1], [], []>} : vector<8x32xbf16>, vector<32x128xbf16>, vector<8x128xf32> -> vector<8x128xf32>
    %106 = arith.addf %103, %105 : vector<8x128xf32>
    %107 = arith.negf %106 : vector<8x128xf32>
    %108 = math.exp %107 : vector<8x128xf32>
    %cst_29 = arith.constant 1.000000e+00 : f32
    %109 = vector.broadcast %cst_29 : f32 to vector<8x128xf32>
    %110 = arith.addf %109, %108 : vector<8x128xf32>
    %111 = arith.divf %109, %110 : vector<8x128xf32>
    %112 = vector.extract_strided_slice %111 {offsets = [0, 0], sizes = [8, 32], strides = [1, 1]} : vector<8x128xf32> to vector<8x32xf32>
    %113 = vector.extract_strided_slice %111 {offsets = [0, 32], sizes = [8, 32], strides = [1, 1]} : vector<8x128xf32> to vector<8x32xf32>
    %114 = vector.extract_strided_slice %111 {offsets = [0, 64], sizes = [8, 32], strides = [1, 1]} : vector<8x128xf32> to vector<8x32xf32>
    %cst_30 = arith.constant 2.000000e+00 : f32
    %115 = vector.broadcast %cst_30 : f32 to vector<8x32xf32>
    %116 = arith.mulf %115, %114 : vector<8x32xf32>
    %cst_31 = arith.constant 1.000000e+00 : f32
    %117 = vector.broadcast %cst_31 : f32 to vector<8x32xf32>
    %118 = arith.subf %116, %117 : vector<8x32xf32>
    %119 = vector.extract_strided_slice %111 {offsets = [0, 96], sizes = [8, 32], strides = [1, 1]} : vector<8x128xf32> to vector<8x32xf32>
    %120 = arith.mulf %113, %100 : vector<8x32xf32>
    %121 = arith.mulf %112, %118 : vector<8x32xf32>
    %122 = arith.addf %120, %121 : vector<8x32xf32>
    %123 = math.tanh %122 : vector<8x32xf32>
    %124 = arith.mulf %119, %123 : vector<8x32xf32>
    %125 = vector.extract_strided_slice %9 {offsets = [40, 0], sizes = [8, 128], strides = [1, 1]} : vector<64x128xf32> to vector<8x128xf32>
    %126 = arith.truncf %124 : vector<8x32xf32> to vector<8x32xbf16>
    %cst_32 = arith.constant dense<0.000000e+00> : vector<8x128xf32>
    %127 = tpu.matmul %126, %12, %cst_32 {dimension_numbers = #tpu.dot_dimension_numbers<[1], [0], [0], [1], [0, 0, 1, 1], [], []>} : vector<8x32xbf16>, vector<32x128xbf16>, vector<8x128xf32> -> vector<8x128xf32>
    %128 = arith.addf %125, %127 : vector<8x128xf32>
    %129 = arith.negf %128 : vector<8x128xf32>
    %130 = math.exp %129 : vector<8x128xf32>
    %cst_33 = arith.constant 1.000000e+00 : f32
    %131 = vector.broadcast %cst_33 : f32 to vector<8x128xf32>
    %132 = arith.addf %131, %130 : vector<8x128xf32>
    %133 = arith.divf %131, %132 : vector<8x128xf32>
    %134 = vector.extract_strided_slice %133 {offsets = [0, 0], sizes = [8, 32], strides = [1, 1]} : vector<8x128xf32> to vector<8x32xf32>
    %135 = vector.extract_strided_slice %133 {offsets = [0, 32], sizes = [8, 32], strides = [1, 1]} : vector<8x128xf32> to vector<8x32xf32>
    %136 = vector.extract_strided_slice %133 {offsets = [0, 64], sizes = [8, 32], strides = [1, 1]} : vector<8x128xf32> to vector<8x32xf32>
    %cst_34 = arith.constant 2.000000e+00 : f32
    %137 = vector.broadcast %cst_34 : f32 to vector<8x32xf32>
    %138 = arith.mulf %137, %136 : vector<8x32xf32>
    %cst_35 = arith.constant 1.000000e+00 : f32
    %139 = vector.broadcast %cst_35 : f32 to vector<8x32xf32>
    %140 = arith.subf %138, %139 : vector<8x32xf32>
    %141 = vector.extract_strided_slice %133 {offsets = [0, 96], sizes = [8, 32], strides = [1, 1]} : vector<8x128xf32> to vector<8x32xf32>
    %142 = arith.mulf %135, %122 : vector<8x32xf32>
    %143 = arith.mulf %134, %140 : vector<8x32xf32>
    %144 = arith.addf %142, %143 : vector<8x32xf32>
    %145 = math.tanh %144 : vector<8x32xf32>
    %146 = arith.mulf %141, %145 : vector<8x32xf32>
    %147 = vector.extract_strided_slice %9 {offsets = [48, 0], sizes = [8, 128], strides = [1, 1]} : vector<64x128xf32> to vector<8x128xf32>
    %148 = arith.truncf %146 : vector<8x32xf32> to vector<8x32xbf16>
    %cst_36 = arith.constant dense<0.000000e+00> : vector<8x128xf32>
    %149 = tpu.matmul %148, %12, %cst_36 {dimension_numbers = #tpu.dot_dimension_numbers<[1], [0], [0], [1], [0, 0, 1, 1], [], []>} : vector<8x32xbf16>, vector<32x128xbf16>, vector<8x128xf32> -> vector<8x128xf32>
    %150 = arith.addf %147, %149 : vector<8x128xf32>
    %151 = arith.negf %150 : vector<8x128xf32>
    %152 = math.exp %151 : vector<8x128xf32>
    %cst_37 = arith.constant 1.000000e+00 : f32
    %153 = vector.broadcast %cst_37 : f32 to vector<8x128xf32>
    %154 = arith.addf %153, %152 : vector<8x128xf32>
    %155 = arith.divf %153, %154 : vector<8x128xf32>
    %156 = vector.extract_strided_slice %155 {offsets = [0, 0], sizes = [8, 32], strides = [1, 1]} : vector<8x128xf32> to vector<8x32xf32>
    %157 = vector.extract_strided_slice %155 {offsets = [0, 32], sizes = [8, 32], strides = [1, 1]} : vector<8x128xf32> to vector<8x32xf32>
    %158 = vector.extract_strided_slice %155 {offsets = [0, 64], sizes = [8, 32], strides = [1, 1]} : vector<8x128xf32> to vector<8x32xf32>
    %cst_38 = arith.constant 2.000000e+00 : f32
    %159 = vector.broadcast %cst_38 : f32 to vector<8x32xf32>
    %160 = arith.mulf %159, %158 : vector<8x32xf32>
    %cst_39 = arith.constant 1.000000e+00 : f32
    %161 = vector.broadcast %cst_39 : f32 to vector<8x32xf32>
    %162 = arith.subf %160, %161 : vector<8x32xf32>
    %163 = vector.extract_strided_slice %155 {offsets = [0, 96], sizes = [8, 32], strides = [1, 1]} : vector<8x128xf32> to vector<8x32xf32>
    %164 = arith.mulf %157, %144 : vector<8x32xf32>
    %165 = arith.mulf %156, %162 : vector<8x32xf32>
    %166 = arith.addf %164, %165 : vector<8x32xf32>
    %167 = math.tanh %166 : vector<8x32xf32>
    %168 = arith.mulf %163, %167 : vector<8x32xf32>
    %169 = vector.extract_strided_slice %9 {offsets = [56, 0], sizes = [8, 128], strides = [1, 1]} : vector<64x128xf32> to vector<8x128xf32>
    %170 = arith.truncf %168 : vector<8x32xf32> to vector<8x32xbf16>
    %cst_40 = arith.constant dense<0.000000e+00> : vector<8x128xf32>
    %171 = tpu.matmul %170, %12, %cst_40 {dimension_numbers = #tpu.dot_dimension_numbers<[1], [0], [0], [1], [0, 0, 1, 1], [], []>} : vector<8x32xbf16>, vector<32x128xbf16>, vector<8x128xf32> -> vector<8x128xf32>
    %172 = arith.addf %169, %171 : vector<8x128xf32>
    %173 = arith.negf %172 : vector<8x128xf32>
    %174 = math.exp %173 : vector<8x128xf32>
    %cst_41 = arith.constant 1.000000e+00 : f32
    %175 = vector.broadcast %cst_41 : f32 to vector<8x128xf32>
    %176 = arith.addf %175, %174 : vector<8x128xf32>
    %177 = arith.divf %175, %176 : vector<8x128xf32>
    %178 = vector.extract_strided_slice %177 {offsets = [0, 0], sizes = [8, 32], strides = [1, 1]} : vector<8x128xf32> to vector<8x32xf32>
    %179 = vector.extract_strided_slice %177 {offsets = [0, 32], sizes = [8, 32], strides = [1, 1]} : vector<8x128xf32> to vector<8x32xf32>
    %180 = vector.extract_strided_slice %177 {offsets = [0, 64], sizes = [8, 32], strides = [1, 1]} : vector<8x128xf32> to vector<8x32xf32>
    %cst_42 = arith.constant 2.000000e+00 : f32
    %181 = vector.broadcast %cst_42 : f32 to vector<8x32xf32>
    %182 = arith.mulf %181, %180 : vector<8x32xf32>
    %cst_43 = arith.constant 1.000000e+00 : f32
    %183 = vector.broadcast %cst_43 : f32 to vector<8x32xf32>
    %184 = arith.subf %182, %183 : vector<8x32xf32>
    %185 = vector.extract_strided_slice %177 {offsets = [0, 96], sizes = [8, 32], strides = [1, 1]} : vector<8x128xf32> to vector<8x32xf32>
    %186 = arith.mulf %179, %166 : vector<8x32xf32>
    %187 = arith.mulf %178, %184 : vector<8x32xf32>
    %188 = arith.addf %186, %187 : vector<8x32xf32>
    %189 = math.tanh %188 : vector<8x32xf32>
    %190 = arith.mulf %185, %189 : vector<8x32xf32>
    %c0_44 = arith.constant 0 : index
    %c0_45 = arith.constant 0 : index
    %c0_46 = arith.constant 0 : index
    %191 = vector.load %arg5[%c0_44, %c0_45, %c0_46] : memref<1x1x32xf32, #tpu.memory_space<vmem>>, vector<1x1x32xf32>
    %192 = vector.shape_cast %191 : vector<1x1x32xf32> to vector<1x32xf32>
    %193 = vector.broadcast %192 : vector<1x32xf32> to vector<8x32xf32>
    %194 = arith.mulf %190, %193 : vector<8x32xf32>
    %cst_47 = arith.constant dense<0.000000e+00> : vector<8xf32>
    %195 = vector.multi_reduction <add>, %194, %cst_47 [1] : vector<8x32xf32> to vector<8xf32>
    %196 = vector.shape_cast %195 : vector<8xf32> to vector<8x1xf32>
    %c0_48 = arith.constant 0 : index
    %c0_49 = arith.constant 0 : index
    %c0_50 = arith.constant 0 : index
    %197 = vector.load %arg6[%c0_48, %c0_49, %c0_50] : memref<1x8x1xf32, #tpu.memory_space<vmem>>, vector<1x8x1xf32>
    %198 = vector.shape_cast %197 : vector<1x8x1xf32> to vector<8x1xf32>
    %199 = vector.shape_cast %196 : vector<8x1xf32> to vector<1x8x1xf32>
    tpu.vector_store %arg6[%c0_48, %c0_49, %c0_50], %199 {strides = array<i32>} : memref<1x8x1xf32, #tpu.memory_space<vmem>>, vector<1x8x1xf32>,
    return
  }
  func.func @transform_0(%arg0: i32) -> (i32, i32) {
    %c0_i32 = arith.constant 0 : i32
    %c0_i32_0 = arith.constant 0 : i32
    %c0_i32_1 = arith.constant 0 : i32
    return %c0_i32, %c0_i32_0 : i32, i32
  }
  func.func @transform_1(%arg0: i32) -> (i32, i32, i32) {
    %c0_i32 = arith.constant 0 : i32
    %c0_i32_0 = arith.constant 0 : i32
    %c0_i32_1 = arith.constant 0 : i32
    return %arg0, %c0_i32, %c0_i32_0 : i32, i32, i32
  }
  func.func @transform_2(%arg0: i32) -> (i32, i32, i32) {
    %c0_i32 = arith.constant 0 : i32
    %c0_i32_0 = arith.constant 0 : i32
    %c0_i32_1 = arith.constant 0 : i32
    return %arg0, %c0_i32, %c0_i32_0 : i32, i32, i32
  }
  func.func @transform_3(%arg0: i32) -> (i32, i32, i32) {
    %c0_i32 = arith.constant 0 : i32
    %c0_i32_0 = arith.constant 0 : i32
    %c0_i32_1 = arith.constant 0 : i32
    return %arg0, %c0_i32, %c0_i32_0 : i32, i32, i32
  }
  func.func @transform_4(%arg0: i32) -> (i32, i32, i32) {
    %c0_i32 = arith.constant 0 : i32
    %c0_i32_0 = arith.constant 0 : i32
    %c0_i32_1 = arith.constant 0 : i32
    return %arg0, %c0_i32, %c0_i32_0 : i32, i32, i32
  }
  func.func @transform_5(%arg0: i32) -> (i32, i32, i32) {
    %c0_i32 = arith.constant 0 : i32
    %c0_i32_0 = arith.constant 0 : i32
    %c0_i32_1 = arith.constant 0 : i32
    return %arg0, %c0_i32, %c0_i32_0 : i32, i32, i32
  }
}

</mosaic_0001>

<bundles_post_ra>
// kernel: tpu_custom_call.1
= control target key start
LH: loop header
LB: loop body
LE: loop exit
PB: predicated region body
PF: predicated region fallthrough
CT: control target
= control target key end

     0   :  { %vm55_vm0 = vcmask 1041408   ;;  %vm56_vm1 = vcmask 1042432   ;;  %v924_v0 = vmov 0.0   ;;  %v925_v4 = vmov 65535   ;;  %s929_s11 = smov 32   ;;  %s930_s21 = smov 96   ;;  %s1133_s2 = inlined_call_operand.vmem [shape: f32[1,32,128], index: 2, kind: input, shape index: {}]   ;;  %s1134_s1 = inlined_call_operand.vmem [shape: f32[1,5,128], index: 1, kind: input, shape index: {}]   ;;  %s1135_s0 = inlined_call_operand.vmem [shape: f32[64,5], index: 0, kind: input, shape index: {}]   ;;  %s1136_s3 = inlined_call_operand.vmem [shape: f32[1,1,128], index: 3, kind: input, shape index: {}]   ;;  %s1137_s4 = inlined_call_operand.vmem [shape: f32[1,1,32], index: 4, kind: input, shape index: {}]   ;;  %s1138_s5 = inlined_call_operand.vmem [shape: f32[1,8,1], index: 5, kind: output, shape index: {}]  }
   0x1   :  { %805 = vmatprep.subr.bf16.mxu1 %v924_v0  ;;  %v127_v1 = vld [vmem:[%s1133_s2] sm:$0xff]  ;;  %v128_v2 = vld [vmem:[%s1133_s2 + $0x8] sm:$0xff]  ;;  %v57_v5 = vsel %vm55_vm0, 4294967295, %v925_v4  ;;  %v129_v9 = vld [vmem:[%s1133_s2 + $0x10] sm:$0xff]  ;;  %vm42_vm2 = vcmask 39936   ;;  %vm926_vm3 = vmmov 0  }
   0x2   :  { %v33_v3 = vld [vmem:[%s1134_s1] sm:$0x1f]  ;;  %v971_v6 = vpack.c.bf16 %v128_v2, %v127_v1  ;;  %v58_v8 = vsel %vm56_vm1, %v57_v5, 0  ;;  %v130_v10 = vld [vmem:[%s1133_s2 + $0x18] sm:$0xff]  ;;  %v22_v12 = vld [vmem:[%s1135_s0 + $0x8] sm:$0xff]  ;;  %809 = vmatprep.mubr.msk.bf16.mxu1 %vm926_vm3, %v924_v0  ;;  %v927_v19 = vmov 0  }
   0x3   :  { %v34_v7 = vpack.c.bf16 %v33_v3, %v33_v3  ;;  %v21_v11 = vld [vmem:[%s1135_s0] sm:$0xff]  ;;  %v23_v13 = vld [vmem:[%s1135_s0 + $0x10] sm:$0xff]  ;;  %v24_v14 = vld [vmem:[%s1135_s0 + $0x18] sm:$0xff]  ;;  %v994_v16 = vpack.c.bf16 %v130_v10, %v129_v9  ;;  %vm133_vm4 = vcmask 261120   ;;  %vm731_vm5 = vcmask 7168  }
   0x4   :  { %806 = vmatpush3.bf16.msra.mxu1 %v971_v6  ;;  %v29_v17 = vpack.c.bf16 %v22_v12, %v21_v11  ;;  %v30_v18 = vpack.c.bf16 %v24_v14, %v23_v13  ;;  %v1015_v20 = vld [vmem:[%s1136_s3] ss:$0 sm:$0xff]  ;;  %s928_s3 = smov 64   ;;  %v26_v2 = vld [vmem:[%s1135_s0 + $0x28] sm:$0xff]  ;;  %v27_v3 = vld [vmem:[%s1135_s0 + $0x30] sm:$0xff] }
   0x5   :  { %v60_v15 = vand.u32 %v58_v8, %v34_v7  ;;  %807 = vmatprep.subr.bf16.mxu1 %v924_v0  ;;  %v25_v1 = vld [vmem:[%s1135_s0 + $0x20] sm:$0xff]  ;;  %v28_v5 = vld [vmem:[%s1135_s0 + $0x38] sm:$0xff] }
   0x6   :  { %797 = vmatprep.mubr.msk.bf16.mxu0 %vm42_vm2, %v29_v17  ;;  %v31_v4 = vpack.c.bf16 %v26_v2, %v25_v1  ;;  %v32_v7 = vpack.c.bf16 %v28_v5, %v27_v3 }
   0x7   :  { %795 = vmatprep.subr.bf16.mxu0 %v60_v15 }
   0x8   :  { %796 = vmatpush3.bf16.msra.mxu0 %v60_v15  ;;  %808 = vmatpush3.bf16.msra.mxu1 %v994_v16 }
   0x9   :  { %821 = vmatprep.subr.bf16.mxu0 %v924_v0  ;;  %813 = vmatprep.subr.bf16.mxu1 %v924_v0 }
   0xb   :  { %798 = vmatmul.mubr.msk.bf16.vlgmr.msra.gmra.mrb[0].mxu0 %vm42_vm2, %v30_v18  ;;  %810 = vmatmul.mubr.bf16.vlgmr.msra.gmra.mrb[0].mxu1 %v927_v19 }
   0xc   :  { %822 = vmatpush3.bf16.msra.mxu0 %v971_v6  ;;  %814 = vmatpush3.bf16.msra.mxu1 %v971_v6 }
   0xd   :  { %817 = vmatprep.mubr.msk.bf16.mxu1 %vm926_vm3, %v924_v0  ;;  %815 = vmatprep.subr.bf16.mxu1 %v924_v0 }
   0xe   :  { %823 = vmatprep.subr.bf16.mxu0 %v924_v0  ;;  %801 = vmatprep.mubr.msk.bf16.mxu0 %vm42_vm2, %v31_v4 }
  0x10   :  { %824 = vmatpush3.bf16.msra.mxu0 %v994_v16  ;;  %816 = vmatpush3.bf16.msra.mxu1 %v994_v16 }
  0x11   :  { %837 = vmatprep.subr.bf16.mxu0 %v924_v0  ;;  %829 = vmatprep.subr.bf16.mxu1 %v924_v0 }
  0x13   :  { %802 = vmatmul.mubr.msk.bf16.gmra.mrb[4].mxu0 %vm42_vm2, %v32_v7 }
  0x14   :  { %825 = vmatprep.mubr.msk.bf16.mxu0 %vm926_vm3, %v924_v0 }
  0xde   :  { %v1017_v21 = vpop.f32.mrb[0].mxu0  ;;  %v171_v23 = vpop.f32.mrb[0].mxu1 }
  0xdf   :  { %v96_v22 = vpop.f32.mrb[1].mxu0  ;;  %v811_v26 = vpop.f32.mrb[1].mxu1  ;;  %v105_v18 = vadd.f32 %v1017_v21, %v1015_v20 }
  0xe0   :  { %v97_v24 = vadd.f32 %v1015_v20, %v96_v22  ;;  %v1020_v25 = vpop.f32.mrb[2].mxu0  ;;  %v174_v28 = vpop.f32.mrb[2].mxu1 }
  0xe1   :  { %v99_v27 = vpop.f32.mrb[3].mxu0  ;;  %v812_v30 = vpop.f32.mrb[3].mxu1 }
  0xe2   :  { %v177_v29 = vadd.f32 %v171_v23, %v97_v24  ;;  %v100_v47 = vadd.f32 %v1015_v20, %v99_v27 }
  0xe4   :  { %v742_v31 = vmul.f32 -1.442695, %v177_v29 }
  0xe6   :  { %876 = vpow2.f32 %v742_v31  ;;  %v1054_v12 = vpop.f32.mrb[4].mxu0 }
  0xe7   :  { %v1056_v13 = vpop.f32.mrb[5].mxu0 }
  0xe8   :  { %v1058_v14 = vpop.f32.mrb[6].mxu0 }
  0xe9   :  { %v1060_v15 = vpop.f32.mrb[7].mxu0 }
  0xf0   :  { %v877_v32 = vpop.eup %876 }
  0xf1   :  { %v181_v33 = vadd.f32 1.0, %v877_v32 }
  0xf3   :  { %878 = vrcp.f32 %v181_v33 }
  0xfd   :  { %v879_v34 = vpop.eup %878 }
  0xfe   :  { %v184_v35 = vmul.f32 2.0, %v879_v34  ;;  %v186_v39 = vmul.f32 0.0, %v879_v34 }
 0x100   :  { %v743_v36 = vadd.f32 -1.0, %v184_v35 }
 0x102   :  { %188 = vrot.lane.b32.xlu0 %v743_v36, %s928_s3 }
 0x174   :  { %v189_v37 = vpop.permute.xlu0 %188 }
 0x175   :  { %v191_v38 = vmul.f32 %v879_v34, %v189_v37 }
 0x177   :  { %193 = vrot.lane.b32.xlu0 %v191_v38, %s929_s11 }
 0x1e9   :  { %v194_v40 = vpop.permute.xlu0 %193 }
 0x1ea   :  { %v196_v41 = vadd.f32 %v194_v40, %v186_v39 }
 0x1ec   :  { %880 = vtanh.f32 %v196_v41 }
 0x1f6   :  { %v881_v42 = vpop.eup %880 }
 0x1f7   :  { %199 = vrot.lane.b32.xlu1 %v881_v42, %s928_s3  ;;  %v108_v42 = vadd.f32 %v1020_v25, %v1015_v20 }
 0x269   :  { %v200_v43 = vpop.permute.xlu1 %199 }
 0x26a   :  { %v202_v44 = vmul.f32 %v879_v34, %v200_v43 }
 0x26c   :  { %v203_v45 = vpack.c.bf16 %v202_v44, %v202_v44 }
 0x26e   :  { %205 = vrot.lane.b32.xlu1 %v203_v45, %s929_s11 }
 0x2e0   :  { %v206_v46 = vpop.permute.xlu1 %205 }
 0x2e1   :  { %818 = vmatmul.mubr.msk.bf16.vlgmr.msra.gmra.mrb[4].mxu1 %vm133_vm4, %v206_v46 }
 0x2e2   :  { %830 = vmatpush3.bf16.msra.mxu1 %v971_v6  ;;  %833 = vmatprep.mubr.msk.bf16.mxu1 %vm926_vm3, %v924_v0 }
 0x2e3   :  { %831 = vmatprep.subr.bf16.mxu1 %v924_v0 }
 0x2e6   :  { %832 = vmatpush3.bf16.msra.mxu1 %v994_v16 }
 0x2e7   :  { %845 = vmatprep.subr.bf16.mxu1 %v924_v0 }
 0x3b4   :  { %v244_v48 = vpop.f32.mrb[4].mxu1 }
 0x3b5   :  { %v250_v49 = vadd.f32 %v244_v48, %v100_v47  ;;  %v819_v50 = vpop.f32.mrb[5].mxu1 }
 0x3b6   :  { %v247_v51 = vpop.f32.mrb[6].mxu1 }
 0x3b7   :  { %v745_v52 = vmul.f32 -1.442695, %v250_v49  ;;  %v820_v53 = vpop.f32.mrb[7].mxu1 }
 0x3b9   :  { %882 = vpow2.f32 %v745_v52 }
 0x3c3   :  { %v883_v54 = vpop.eup %882 }
 0x3c4   :  { %v254_v55 = vadd.f32 1.0, %v883_v54 }
 0x3c6   :  { %884 = vrcp.f32 %v254_v55 }
 0x3d0   :  { %v885_v56 = vpop.eup %884 }
 0x3d1   :  { %v257_v57 = vmul.f32 2.0, %v885_v56  ;;  %v259_v61 = vmul.f32 %v885_v56, %v196_v41 }
 0x3d3   :  { %v746_v58 = vadd.f32 -1.0, %v257_v57 }
 0x3d5   :  { %261 = vrot.lane.b32.xlu0 %v746_v58, %s928_s3 }
 0x447   :  { %v262_v59 = vpop.permute.xlu0 %261 }
 0x448   :  { %v264_v60 = vmul.f32 %v885_v56, %v262_v59 }
 0x44a   :  { %266 = vrot.lane.b32.xlu1 %v264_v60, %s929_s11 }
 0x4bc   :  { %v267_v62 = vpop.permute.xlu1 %266 }
 0x4bd   :  { %v269_v63 = vadd.f32 %v267_v62, %v259_v61 }
 0x4bf   :  { %886 = vtanh.f32 %v269_v63 }
 0x4c9   :  { %v887_v8 = vpop.eup %886 }
 0x4ca   :  { %272 = vrot.lane.b32.xlu0 %v887_v8, %s928_s3 }
 0x53c   :  { %v273_v9 = vpop.permute.xlu0 %272 }
 0x53d   :  { %v275_v10 = vmul.f32 %v885_v56, %v273_v9 }
 0x53f   :  { %v276_v11 = vpack.c.bf16 %v275_v10, %v275_v10 }
 0x541   :  { %278 = vrot.lane.b32.xlu1 %v276_v11, %s929_s11 }
 0x5b3   :  { %v279_v17 = vpop.permute.xlu1 %278 }
 0x5b4   :  { %826 = vmatmul.mubr.msk.bf16.vlgmr.msra.gmra.mrb[8].mxu0 %vm133_vm4, %v279_v17 }
 0x5b5   :  { %838 = vmatpush3.bf16.msra.mxu0 %v971_v6  ;;  %841 = vmatprep.mubr.msk.bf16.mxu0 %vm926_vm3, %v924_v0 }
 0x5b6   :  { %839 = vmatprep.subr.bf16.mxu0 %v924_v0 }
 0x5b9   :  { %840 = vmatpush3.bf16.msra.mxu0 %v994_v16 }
 0x5ba   :  { %853 = vmatprep.subr.bf16.mxu0 %v924_v0 }
 0x687   :  { %v317_v19 = vpop.f32.mrb[8].mxu0 }
 0x688   :  { %v323_v22 = vadd.f32 %v317_v19, %v105_v18  ;;  %v827_v23 = vpop.f32.mrb[9].mxu0 }
 0x689   :  { %v320_v24 = vpop.f32.mrb[10].mxu0 }
 0x68a   :  { %v748_v26 = vmul.f32 -1.442695, %v323_v22  ;;  %v828_v27 = vpop.f32.mrb[11].mxu0 }
 0x68c   :  { %888 = vpow2.f32 %v748_v26 }
 0x696   :  { %v889_v28 = vpop.eup %888 }
 0x697   :  { %v327_v29 = vadd.f32 1.0, %v889_v28 }
 0x699   :  { %890 = vrcp.f32 %v327_v29 }
 0x6a3   :  { %v891_v30 = vpop.eup %890 }
 0x6a4   :  { %v330_v31 = vmul.f32 2.0, %v891_v30  ;;  %v332_v21 = vmul.f32 %v891_v30, %v269_v63  ;;  %v113_v63 = vadd.f32 %v1015_v20, %v1056_v13 }
 0x6a6   :  { %v749_v32 = vadd.f32 -1.0, %v330_v31 }
 0x6a8   :  { %334 = vrot.lane.b32.xlu0 %v749_v32, %s928_s3 }
 0x71a   :  { %v335_v33 = vpop.permute.xlu0 %334 }
 0x71b   :  { %v337_v34 = vmul.f32 %v891_v30, %v335_v33 }
 0x71d   :  { %339 = vrot.lane.b32.xlu1 %v337_v34, %s929_s11 }
 0x78f   :  { %v340_v35 = vpop.permute.xlu1 %339 }
 0x790   :  { %v342_v36 = vadd.f32 %v340_v35, %v332_v21 }
 0x792   :  { %892 = vtanh.f32 %v342_v36 }
 0x79c   :  { %v893_v37 = vpop.eup %892 }
 0x79d   :  { %345 = vrot.lane.b32.xlu0 %v893_v37, %s928_s3 }
 0x80f   :  { %v346_v38 = vpop.permute.xlu0 %345 }
 0x810   :  { %v348_v39 = vmul.f32 %v891_v30, %v346_v38  ;;  %v116_v30 = vadd.f32 %v1015_v20, %v1060_v15 }
 0x812   :  { %v349_v40 = vpack.c.bf16 %v348_v39, %v348_v39 }
 0x814   :  { %351 = vrot.lane.b32.xlu1 %v349_v40, %s929_s11 }
 0x886   :  { %v352_v41 = vpop.permute.xlu1 %351 }
 0x887   :  { %834 = vmatmul.mubr.msk.bf16.vlgmr.msra.gmra.mrb[8].mxu1 %vm133_vm4, %v352_v41 }
 0x888   :  { %846 = vmatpush3.bf16.msra.mxu1 %v971_v6  ;;  %849 = vmatprep.mubr.msk.bf16.mxu1 %vm926_vm3, %v924_v0 }
 0x889   :  { %847 = vmatprep.subr.bf16.mxu1 %v924_v0 }
 0x88c   :  { %848 = vmatpush3.bf16.msra.mxu1 %v994_v16 }
 0x88d   :  { %861 = vmatprep.subr.bf16.mxu1 %v924_v0 }
 0x95a   :  { %v390_v43 = vpop.f32.mrb[8].mxu1 }
 0x95b   :  { %v396_v44 = vadd.f32 %v390_v43, %v108_v42  ;;  %v835_v45 = vpop.f32.mrb[9].mxu1 }
 0x95c   :  { %v393_v46 = vpop.f32.mrb[10].mxu1 }
 0x95d   :  { %v751_v47 = vmul.f32 -1.442695, %v396_v44  ;;  %v836_v48 = vpop.f32.mrb[11].mxu1 }
 0x95f   :  { %894 = vpow2.f32 %v751_v47  ;;  %v121_v47 = vadd.f32 %v1054_v12, %v1015_v20 }
 0x969   :  { %v895_v49 = vpop.eup %894 }
 0x96a   :  { %v400_v50 = vadd.f32 1.0, %v895_v49 }
 0x96c   :  { %896 = vrcp.f32 %v400_v50 }
 0x976   :  { %v897_v51 = vpop.eup %896 }
 0x977   :  { %v403_v52 = vmul.f32 2.0, %v897_v51  ;;  %v405_v25 = vmul.f32 %v897_v51, %v342_v36 }
 0x979   :  { %v752_v53 = vadd.f32 -1.0, %v403_v52 }
 0x97b   :  { %407 = vrot.lane.b32.xlu0 %v752_v53, %s928_s3 }
 0x9ed   :  { %v408_v54 = vpop.permute.xlu0 %407 }
 0x9ee   :  { %v410_v55 = vmul.f32 %v897_v51, %v408_v54 }
 0x9f0   :  { %412 = vrot.lane.b32.xlu1 %v410_v55, %s929_s11 }
 0xa62   :  { %v413_v56 = vpop.permute.xlu1 %412 }
 0xa63   :  { %v415_v57 = vadd.f32 %v413_v56, %v405_v25 }
 0xa65   :  { %898 = vtanh.f32 %v415_v57 }
 0xa6f   :  { %v899_v58 = vpop.eup %898 }
 0xa70   :  { %418 = vrot.lane.b32.xlu0 %v899_v58, %s928_s3 }
 0xae2   :  { %v419_v59 = vpop.permute.xlu0 %418 }
 0xae3   :  { %v421_v60 = vmul.f32 %v897_v51, %v419_v59 }
 0xae5   :  { %v422_v61 = vpack.c.bf16 %v421_v60, %v421_v60 }
 0xae7   :  { %424 = vrot.lane.b32.xlu1 %v422_v61, %s929_s11 }
 0xb59   :  { %v425_v62 = vpop.permute.xlu1 %424 }
 0xb5a   :  { %842 = vmatmul.mubr.msk.bf16.vlgmr.msra.gmra.mrb[12].mxu0 %vm133_vm4, %v425_v62 }
 0xb5b   :  { %854 = vmatpush3.bf16.msra.mxu0 %v971_v6  ;;  %857 = vmatprep.mubr.msk.bf16.mxu0 %vm926_vm3, %v924_v0 }
 0xb5c   :  { %855 = vmatprep.subr.bf16.mxu0 %v924_v0 }
 0xb5f   :  { %856 = vmatpush3.bf16.msra.mxu0 %v994_v16 }
 0xc2d   :  { %v463_v1 = vpop.f32.mrb[12].mxu0 }
 0xc2e   :  { %v469_v2 = vadd.f32 %v463_v1, %v113_v63  ;;  %v843_v3 = vpop.f32.mrb[13].mxu0 }
 0xc2f   :  { %v466_v4 = vpop.f32.mrb[14].mxu0 }
 0xc30   :  { %v754_v5 = vmul.f32 -1.442695, %v469_v2  ;;  %v844_v7 = vpop.f32.mrb[15].mxu0  ;;  %v124_v4 = vadd.f32 %v1058_v14, %v1015_v20  ;;  %v765_v20 = vld [vmem:[%s1137_s4] ss:$0 sm:$0xff] }
 0xc32   :  { %900 = vpow2.f32 %v754_v5 }
 0xc3c   :  { %v901_v8 = vpop.eup %900 }
 0xc3d   :  { %v473_v9 = vadd.f32 1.0, %v901_v8 }
 0xc3f   :  { %902 = vrcp.f32 %v473_v9 }
 0xc49   :  { %v903_v10 = vpop.eup %902 }
 0xc4a   :  { %v476_v11 = vmul.f32 2.0, %v903_v10  ;;  %v478_v13 = vmul.f32 %v903_v10, %v415_v57 }
 0xc4c   :  { %v755_v17 = vadd.f32 -1.0, %v476_v11 }
 0xc4e   :  { %480 = vrot.lane.b32.xlu0 %v755_v17, %s928_s3 }
 0xcc0   :  { %v481_v18 = vpop.permute.xlu0 %480 }
 0xcc1   :  { %v483_v19 = vmul.f32 %v903_v10, %v481_v18 }
 0xcc3   :  { %485 = vrot.lane.b32.xlu1 %v483_v19, %s929_s11 }
 0xd35   :  { %v486_v22 = vpop.permute.xlu1 %485 }
 0xd36   :  { %v488_v23 = vadd.f32 %v486_v22, %v478_v13 }
 0xd38   :  { %904 = vtanh.f32 %v488_v23 }
 0xd42   :  { %v905_v24 = vpop.eup %904 }
 0xd43   :  { %491 = vrot.lane.b32.xlu0 %v905_v24, %s928_s3 }
 0xdb5   :  { %v492_v26 = vpop.permute.xlu0 %491 }
 0xdb6   :  { %v494_v27 = vmul.f32 %v903_v10, %v492_v26 }
 0xdb8   :  { %v495_v28 = vpack.c.bf16 %v494_v27, %v494_v27 }
 0xdba   :  { %497 = vrot.lane.b32.xlu1 %v495_v28, %s929_s11 }
 0xe2c   :  { %v498_v29 = vpop.permute.xlu1 %497 }
 0xe2d   :  { %850 = vmatmul.mubr.msk.bf16.vlgmr.msra.gmra.mrb[12].mxu1 %vm133_vm4, %v498_v29 }
 0xe2e   :  { %862 = vmatpush3.bf16.msra.mxu1 %v971_v6  ;;  %865 = vmatprep.mubr.msk.bf16.mxu1 %vm926_vm3, %v924_v0 }
 0xe2f   :  { %863 = vmatprep.subr.bf16.mxu1 %v924_v0 }
 0xe32   :  { %864 = vmatpush3.bf16.msra.mxu1 %v994_v16 }
 0xf00   :  { %v536_v31 = vpop.f32.mrb[12].mxu1 }
 0xf01   :  { %v542_v32 = vadd.f32 %v536_v31, %v116_v30  ;;  %v851_v33 = vpop.f32.mrb[13].mxu1 }
 0xf02   :  { %v539_v34 = vpop.f32.mrb[14].mxu1 }
 0xf03   :  { %v757_v21 = vmul.f32 -1.442695, %v542_v32  ;;  %v852_v35 = vpop.f32.mrb[15].mxu1 }
 0xf05   :  { %906 = vpow2.f32 %v757_v21 }
 0xf0f   :  { %v907_v36 = vpop.eup %906 }
 0xf10   :  { %v546_v37 = vadd.f32 1.0, %v907_v36 }
 0xf12   :  { %908 = vrcp.f32 %v546_v37 }
 0xf1c   :  { %v909_v6 = vpop.eup %908 }
 0xf1d   :  { %v549_v38 = vmul.f32 2.0, %v909_v6  ;;  %v551_v15 = vmul.f32 %v909_v6, %v488_v23 }
 0xf1f   :  { %v758_v39 = vadd.f32 -1.0, %v549_v38 }
 0xf21   :  { %553 = vrot.lane.b32.xlu0 %v758_v39, %s928_s3 }
 0xf93   :  { %v554_v0 = vpop.permute.xlu0 %553 }
 0xf94   :  { %v556_v16 = vmul.f32 %v909_v6, %v554_v0 }
 0xf96   :  { %558 = vrot.lane.b32.xlu1 %v556_v16, %s929_s11 }
0x1008   :  { %v559_v40 = vpop.permute.xlu1 %558 }
0x1009   :  { %v561_v41 = vadd.f32 %v559_v40, %v551_v15 }
0x100b   :  { %910 = vtanh.f32 %v561_v41 }
0x1015   :  { %v911_v42 = vpop.eup %910 }
0x1016   :  { %564 = vrot.lane.b32.xlu0 %v911_v42, %s928_s3 }
0x1088   :  { %v565_v43 = vpop.permute.xlu0 %564 }
0x1089   :  { %v567_v44 = vmul.f32 %v909_v6, %v565_v43 }
0x108b   :  { %v568_v45 = vpack.c.bf16 %v567_v44, %v567_v44 }
0x108d   :  { %570 = vrot.lane.b32.xlu1 %v568_v45, %s929_s11 }
0x10ff   :  { %v571_v46 = vpop.permute.xlu1 %570 }
0x1100   :  { %858 = vmatmul.mubr.msk.bf16.vlgmr.msra.gmra.mrb[16].mxu0 %vm133_vm4, %v571_v46 }
0x11d3   :  { %v609_v48 = vpop.f32.mrb[16].mxu0 }
0x11d4   :  { %v615_v49 = vadd.f32 %v609_v48, %v121_v47  ;;  %v859_v50 = vpop.f32.mrb[17].mxu0 }
0x11d5   :  { %v612_v51 = vpop.f32.mrb[18].mxu0 }
0x11d6   :  { %v760_v52 = vmul.f32 -1.442695, %v615_v49  ;;  %v860_v53 = vpop.f32.mrb[19].mxu0 }
0x11d8   :  { %912 = vpow2.f32 %v760_v52 }
0x11e2   :  { %v913_v54 = vpop.eup %912 }
0x11e3   :  { %v619_v55 = vadd.f32 1.0, %v913_v54 }
0x11e5   :  { %914 = vrcp.f32 %v619_v55 }
0x11ef   :  { %v915_v25 = vpop.eup %914 }
0x11f0   :  { %v622_v56 = vmul.f32 2.0, %v915_v25  ;;  %v624_v12 = vmul.f32 %v915_v25, %v561_v41 }
0x11f2   :  { %v761_v57 = vadd.f32 -1.0, %v622_v56 }
0x11f4   :  { %626 = vrot.lane.b32.xlu0 %v761_v57, %s928_s3 }
0x1266   :  { %v627_v58 = vpop.permute.xlu0 %626 }
0x1267   :  { %v629_v59 = vmul.f32 %v915_v25, %v627_v58 }
0x1269   :  { %631 = vrot.lane.b32.xlu1 %v629_v59, %s929_s11 }
0x12db   :  { %v632_v60 = vpop.permute.xlu1 %631 }
0x12dc   :  { %v634_v61 = vadd.f32 %v632_v60, %v624_v12 }
0x12de   :  { %916 = vtanh.f32 %v634_v61 }
0x12e8   :  { %v917_v62 = vpop.eup %916 }
0x12e9   :  { %637 = vrot.lane.b32.xlu0 %v917_v62, %s928_s3 }
0x135b   :  { %v638_v63 = vpop.permute.xlu0 %637 }
0x135c   :  { %v640_v1 = vmul.f32 %v915_v25, %v638_v63 }
0x135e   :  { %v641_v2 = vpack.c.bf16 %v640_v1, %v640_v1 }
0x1360   :  { %643 = vrot.lane.b32.xlu1 %v641_v2, %s929_s11 }
0x13d2   :  { %v644_v3 = vpop.permute.xlu1 %643 }
0x13d3   :  { %866 = vmatmul.mubr.msk.bf16.vlgmr.msra.gmra.mrb[16].mxu1 %vm133_vm4, %v644_v3 }
0x14a6   :  { %v682_v5 = vpop.f32.mrb[16].mxu1 }
0x14a7   :  { %v688_v7 = vadd.f32 %v682_v5, %v124_v4  ;;  %v867_v8 = vpop.f32.mrb[17].mxu1 }
0x14a8   :  { %v685_v9 = vpop.f32.mrb[18].mxu1 }
0x14a9   :  { %v763_v10 = vmul.f32 -1.442695, %v688_v7  ;;  %v868_v11 = vpop.f32.mrb[19].mxu1 }
0x14ab   :  { %918 = vpow2.f32 %v763_v10 }
0x14b5   :  { %v919_v17 = vpop.eup %918 }
0x14b6   :  { %v692_v18 = vadd.f32 1.0, %v919_v17 }
0x14b8   :  { %920 = vrcp.f32 %v692_v18 }
0x14c2   :  { %v921_v19 = vpop.eup %920 }
0x14c3   :  { %v695_v13 = vmul.f32 2.0, %v921_v19  ;;  %v697_v14 = vmul.f32 %v921_v19, %v634_v61 }
0x14c5   :  { %v764_v22 = vadd.f32 -1.0, %v695_v13 }
0x14c7   :  { %699 = vrot.lane.b32.xlu0 %v764_v22, %s928_s3 }
0x1539   :  { %v700_v23 = vpop.permute.xlu0 %699 }
0x153a   :  { %v702_v24 = vmul.f32 %v921_v19, %v700_v23 }
0x153c   :  { %704 = vrot.lane.b32.xlu1 %v702_v24, %s929_s11 }
0x1540   :  { %720 = vrot.lane.b32.xlu1 %v765_v20, %s930_s21 }
0x15ae   :  { %v705_v26 = vpop.permute.xlu1 %704 }
0x15af   :  { %v707_v27 = vadd.f32 %v705_v26, %v697_v14 }
0x15b1   :  { %922 = vtanh.f32 %v707_v27 }
0x15b2   :  { %v721_v30 = vpop.permute.xlu1 %720 }
0x15bb   :  { %v923_v28 = vpop.eup %922 }
0x15bc   :  { %710 = vrot.lane.b32.xlu0 %v923_v28, %s928_s3 }
0x162e   :  { %v711_v29 = vpop.permute.xlu0 %710 }
0x162f   :  { %v713_v31 = vmul.f32 %v921_v19, %v711_v29 }
0x1631   :  { %v723_v32 = vmul.f32 %v721_v30, %v713_v31 }
0x1633   :  { %725 = vrot.lane.b32.xlu0 %v723_v32, %s929_s11 }
0x16a5   :  { %v726_v33 = vpop.permute.xlu0 %725 }
0x16a6   :  { %v728_v34 = vsel %vm133_vm4, %v726_v33, 0.0 }
0x16a7   :  { %729 = vadd.xlane.f32.xlu1 %v728_v34 }
0x1734   :  { %v730_v21 = vpop.xlane.xlu1 %729 }
0x1735   :  { %732 = vst.msk [vmem:[%s1138_s5] sm:$0xff] %vm731_vm5, %v730_v21 }

</bundles_post_ra>
